<compile_context>
chip_gen: v5e
topology: v5e:2x2
jax: 0.10.0
libtpu: 0.0.40
codegen_flags: <defaults>
</compile_context>

<pallas_src>
import jax
import jax.numpy as jnp
from jax.experimental import pallas as pl
from jax.experimental.pallas import tpu as pltpu

LANE = 128               # lane width: output feature dim is padded up to a multiple of this
SUBLANE = 8              # sublane width: batch tiles are multiples of this
MAX_BATCH_TILE = 2048    # large batch tile to amortize per-grid-step overhead (~0.35 us/step)


def _round_up(x, m):
    return ((x + m - 1) // m) * m


def _cdiv(a, b):
    return -(-a // b)


def _choose_batch_tile(batch, max_tile):
    """Split the (sublane-padded) batch evenly over the fewest tiles <= max_tile.

    Returns (tile_size, padded_batch). Even splitting minimizes zero-padding waste
    compared to always using max_tile (e.g. B=3000 -> 2x1504 instead of 2x2048).
    """
    b8 = _round_up(max(batch, 1), SUBLANE)
    n_tiles = max(1, _cdiv(b8, max_tile))
    tb = _round_up(_cdiv(b8, n_tiles), SUBLANE)
    return tb, n_tiles * tb


def mlp_kernel(x_ref, w1_ref, b1_ref, w2_ref, b2_ref, w3_ref, b3_ref, o_ref):
    # Layer 1: Linear + ReLU (bf16 operands -> MXU, f32 accumulation, f32 elementwise)
    h1 = jnp.dot(x_ref[...], w1_ref[...], preferred_element_type=jnp.float32) + b1_ref[...]
    h1 = jnp.maximum(h1, 0.0)
    # Layer 2: Linear + ReLU
    h2 = jnp.dot(h1.astype(w2_ref.dtype), w2_ref[...],
                 preferred_element_type=jnp.float32) + b2_ref[...]
    h2 = jnp.maximum(h2, 0.0)
    # Layer 3: Linear (no activation), lane-padded output width -> unmasked stores
    out = jnp.dot(h2.astype(w3_ref.dtype), w3_ref[...],
                  preferred_element_type=jnp.float32) + b3_ref[...]
    o_ref[...] = out.astype(o_ref.dtype)


def mlp_forward(x, params, *, batch_tile=MAX_BATCH_TILE):
    w1, b1, w2, b2, w3, b3 = params
    B, in_dim = x.shape
    hidden = w1.shape[1]
    out_dim = w3.shape[1]

    # Lane-dense output: zero-pad w3/b3 out to a multiple of 128 columns (sliced back below).
    out_pad = _round_up(max(out_dim, LANE), LANE)
    w3p = jnp.zeros((hidden, out_pad), w3.dtype).at[:, :out_dim].set(w3)
    b3p = jnp.zeros((1, out_pad), b3.dtype).at[:, :out_dim].set(b3)

    # Batch tiling: even split over the fewest tiles, padded to sublane multiples.
    tb, B_pad = _choose_batch_tile(B, batch_tile)
    if B_pad != B:
        x = jnp.pad(x, ((0, B_pad - B), (0, 0)))

    # Cast matmul operands to bf16 ONCE here (not per grid step). Biases stay f32:
    # bias add / ReLU run in f32 on the VPU (portable to v5e which lacks bf16 VPU ops).
    x_bf = x.astype(jnp.bfloat16)
    w1_bf = w1.astype(jnp.bfloat16)
    w2_bf = w2.astype(jnp.bfloat16)
    w3_bf = w3p.astype(jnp.bfloat16)

    grid = (B_pad // tb,)

    def resident(shape):
        # Weights/biases: constant block index -> DMA'd once, VMEM-resident across grid steps.
        return pl.BlockSpec(shape, lambda i: (0, 0))

    cost = pl.CostEstimate(
        flops=2 * B_pad * (in_dim * hidden + hidden * hidden + hidden * out_pad),
        transcendentals=0,
        bytes_accessed=(x_bf.size * 2 + B_pad * out_pad * 4
                        + (w1_bf.size + w2_bf.size + w3_bf.size) * 2
                        + (b1.size + b2.size + b3p.size) * 4),
    )

    out = pl.pallas_call(
        mlp_kernel,
        out_shape=jax.ShapeDtypeStruct((B_pad, out_pad), jnp.float32),
        grid=grid,
        in_specs=[
            pl.BlockSpec((tb, in_dim), lambda i: (i, 0)),   # x: tiled over batch (pipelined)
            resident((in_dim, hidden)),                     # w1
            resident((1, hidden)),                          # b1
            resident((hidden, hidden)),                     # w2
            resident((1, hidden)),                          # b2
            resident((hidden, out_pad)),                    # w3 (lane-padded)
            resident((1, out_pad)),                         # b3 (lane-padded)
        ],
        out_specs=pl.BlockSpec((tb, out_pad), lambda i: (i, 0)),
        compiler_params=pltpu.CompilerParams(
            dimension_semantics=("parallel",),              # megacore sharding on v7x
            vmem_limit_bytes=32 * 1024 * 1024,              # explicit budget; fits v7x 64 MiB VMEM
        ),
        cost_estimate=cost,
    )(x_bf, w1_bf, b1, w2_bf, b2, w3_bf, b3p)

    return out[:B, :out_dim]


def xavier_uniform(key, fan_in, fan_out, gain):
    # Matches torch.nn.init.xavier_uniform_ semantics; stored as (fan_in, fan_out).
    bound = gain * jnp.sqrt(6.0 / (fan_in + fan_out))
    return jax.random.uniform(key, (fan_in, fan_out), jnp.float32, -bound, bound)


def init_mlp_params(key, in_dim, out_dim, hidden_dim=64):
    gain = jnp.sqrt(2.0)  # nn.init.calculate_gain('relu')
    k1, k2, k3 = jax.random.split(key, 3)
    w1 = xavier_uniform(k1, in_dim, hidden_dim, gain)
    b1 = jnp.full((1, hidden_dim), 0.01, jnp.float32)
    w2 = xavier_uniform(k2, hidden_dim, hidden_dim, gain)
    b2 = jnp.full((1, hidden_dim), 0.01, jnp.float32)
    w3 = xavier_uniform(k3, hidden_dim, out_dim, gain)
    b3 = jnp.full((1, out_dim), 0.01, jnp.float32)
    return (w1, b1, w2, b2, w3, b3)


def mlp_reference(x, params):
    # Reference with the same bf16-operand / f32-accumulate numerics as the kernel.
    w1, b1, w2, b2, w3, b3 = params
    bf = lambda a: a.astype(jnp.bfloat16)
    h1 = jnp.maximum(jnp.dot(bf(x), bf(w1), preferred_element_type=jnp.float32) + b1, 0.0)
    h2 = jnp.maximum(jnp.dot(bf(h1), bf(w2), preferred_element_type=jnp.float32) + b2, 0.0)
    return jnp.dot(bf(h2), bf(w3), preferred_element_type=jnp.float32) + b3


if __name__ == "__main__":
    key = jax.random.PRNGKey(0)
    in_dim, out_dim, hidden_dim = 16, 4, 64
    batch = 8

    pkey, xkey = jax.random.split(key)
    params = init_mlp_params(pkey, in_dim, out_dim, hidden_dim)
    x = jax.random.normal(xkey, (batch, in_dim), jnp.float32)

    out = mlp_forward(x, params)
    out = jax.block_until_ready(out)

    ref = mlp_reference(x, params)
    assert out.shape == (batch, out_dim), out.shape
    assert jnp.allclose(out, ref, atol=1e-3, rtol=1e-3), float(jnp.max(jnp.abs(out - ref)))

    print("KERNEL_OK")
</pallas_src>

<mosaic_0001>
module attributes {stable_mosaic.version = 11 : i64} {
  func.func @mlp_kernel(%arg0: i32, %arg1: memref<8x16xbf16, #tpu.memory_space<vmem>>, %arg2: memref<16x64xbf16, #tpu.memory_space<vmem>>, %arg3: memref<1x64xf32, #tpu.memory_space<vmem>>, %arg4: memref<64x64xbf16, #tpu.memory_space<vmem>>, %arg5: memref<1x64xf32, #tpu.memory_space<vmem>>, %arg6: memref<64x128xbf16, #tpu.memory_space<vmem>>, %arg7: memref<1x128xf32, #tpu.memory_space<vmem>>, %arg8: memref<8x128xf32, #tpu.memory_space<vmem>>) attributes {dimension_semantics = [#tpu.dimension_semantics<parallel>], iteration_bounds = array<i64: 1>, scalar_prefetch = 0 : i64, scratch_operands = 0 : i64, tpu.core_type = #tpu.core_type<tc>, window_params = [{transform_indices = @transform_0, window_bounds = array<i64: 8, 16>}, {pipeline_mode = #tpu.pipeline_mode<synchronous>, transform_indices = @transform_1, window_bounds = array<i64: 16, 64>}, {pipeline_mode = #tpu.pipeline_mode<synchronous>, transform_indices = @transform_2, window_bounds = array<i64: 1, 64>}, {pipeline_mode = #tpu.pipeline_mode<synchronous>, transform_indices = @transform_3, window_bounds = array<i64: 64, 64>}, {pipeline_mode = #tpu.pipeline_mode<synchronous>, transform_indices = @transform_4, window_bounds = array<i64: 1, 64>}, {pipeline_mode = #tpu.pipeline_mode<synchronous>, transform_indices = @transform_5, window_bounds = array<i64: 64, 128>}, {pipeline_mode = #tpu.pipeline_mode<synchronous>, transform_indices = @transform_6, window_bounds = array<i64: 1, 128>}, {transform_indices = @transform_7, window_bounds = array<i64: 8, 128>}]} {
    %c0 = arith.constant 0 : index
    %c0_0 = arith.constant 0 : index
    %0 = vector.load %arg1[%c0, %c0_0] : memref<8x16xbf16, #tpu.memory_space<vmem>>, vector<8x16xbf16>
    %c0_1 = arith.constant 0 : index
    %c0_2 = arith.constant 0 : index
    %1 = vector.load %arg2[%c0_1, %c0_2] : memref<16x64xbf16, #tpu.memory_space<vmem>>, vector<16x64xbf16>
    %cst = arith.constant dense<0.000000e+00> : vector<8x64xf32>
    %2 = tpu.matmul %0, %1, %cst {dimension_numbers = #tpu.dot_dimension_numbers<[1], [0], [0], [1], [0, 0, 1, 1], [], []>} : vector<8x16xbf16>, vector<16x64xbf16>, vector<8x64xf32> -> vector<8x64xf32>
    %c0_3 = arith.constant 0 : index
    %c0_4 = arith.constant 0 : index
    %3 = vector.load %arg3[%c0_3, %c0_4] : memref<1x64xf32, #tpu.memory_space<vmem>>, vector<1x64xf32>
    %4 = vector.broadcast %3 : vector<1x64xf32> to vector<8x64xf32>
    %5 = arith.addf %2, %4 : vector<8x64xf32>
    %cst_5 = arith.constant 0.000000e+00 : f32
    %6 = vector.broadcast %cst_5 : f32 to vector<8x64xf32>
    %7 = arith.maximumf %5, %6 : vector<8x64xf32>
    %8 = arith.truncf %7 : vector<8x64xf32> to vector<8x64xbf16>
    %c0_6 = arith.constant 0 : index
    %c0_7 = arith.constant 0 : index
    %9 = vector.load %arg4[%c0_6, %c0_7] : memref<64x64xbf16, #tpu.memory_space<vmem>>, vector<64x64xbf16>
    %cst_8 = arith.constant dense<0.000000e+00> : vector<8x64xf32>
    %10 = tpu.matmul %8, %9, %cst_8 {dimension_numbers = #tpu.dot_dimension_numbers<[1], [0], [0], [1], [0, 0, 1, 1], [], []>} : vector<8x64xbf16>, vector<64x64xbf16>, vector<8x64xf32> -> vector<8x64xf32>
    %c0_9 = arith.constant 0 : index
    %c0_10 = arith.constant 0 : index
    %11 = vector.load %arg5[%c0_9, %c0_10] : memref<1x64xf32, #tpu.memory_space<vmem>>, vector<1x64xf32>
    %12 = vector.broadcast %11 : vector<1x64xf32> to vector<8x64xf32>
    %13 = arith.addf %10, %12 : vector<8x64xf32>
    %cst_11 = arith.constant 0.000000e+00 : f32
    %14 = vector.broadcast %cst_11 : f32 to vector<8x64xf32>
    %15 = arith.maximumf %13, %14 : vector<8x64xf32>
    %16 = arith.truncf %15 : vector<8x64xf32> to vector<8x64xbf16>
    %c0_12 = arith.constant 0 : index
    %c0_13 = arith.constant 0 : index
    %17 = vector.load %arg6[%c0_12, %c0_13] : memref<64x128xbf16, #tpu.memory_space<vmem>>, vector<64x128xbf16>
    %cst_14 = arith.constant dense<0.000000e+00> : vector<8x128xf32>
    %18 = tpu.matmul %16, %17, %cst_14 {dimension_numbers = #tpu.dot_dimension_numbers<[1], [0], [0], [1], [0, 0, 1, 1], [], []>} : vector<8x64xbf16>, vector<64x128xbf16>, vector<8x128xf32> -> vector<8x128xf32>
    %c0_15 = arith.constant 0 : index
    %c0_16 = arith.constant 0 : index
    %19 = vector.load %arg7[%c0_15, %c0_16] : memref<1x128xf32, #tpu.memory_space<vmem>>, vector<1x128xf32>
    %20 = vector.broadcast %19 : vector<1x128xf32> to vector<8x128xf32>
    %21 = arith.addf %18, %20 : vector<8x128xf32>
    %c0_17 = arith.constant 0 : index
    %c0_18 = arith.constant 0 : index
    %22 = vector.load %arg8[%c0_17, %c0_18] : memref<8x128xf32, #tpu.memory_space<vmem>>, vector<8x128xf32>
    tpu.vector_store %arg8[%c0_17, %c0_18], %21 {strides = array<i32>} : memref<8x128xf32, #tpu.memory_space<vmem>>, vector<8x128xf32>,
    return
  }
  func.func @transform_0(%arg0: i32) -> (i32, i32) {
    %c0_i32 = arith.constant 0 : i32
    %c0_i32_0 = arith.constant 0 : i32
    return %arg0, %c0_i32 : i32, i32
  }
  func.func @transform_1(%arg0: i32) -> (i32, i32) {
    %c0_i32 = arith.constant 0 : i32
    %c0_i32_0 = arith.constant 0 : i32
    %c0_i32_1 = arith.constant 0 : i32
    return %c0_i32, %c0_i32_0 : i32, i32
  }
  func.func @transform_2(%arg0: i32) -> (i32, i32) {
    %c0_i32 = arith.constant 0 : i32
    %c0_i32_0 = arith.constant 0 : i32
    %c0_i32_1 = arith.constant 0 : i32
    return %c0_i32, %c0_i32_0 : i32, i32
  }
  func.func @transform_3(%arg0: i32) -> (i32, i32) {
    %c0_i32 = arith.constant 0 : i32
    %c0_i32_0 = arith.constant 0 : i32
    %c0_i32_1 = arith.constant 0 : i32
    return %c0_i32, %c0_i32_0 : i32, i32
  }
  func.func @transform_4(%arg0: i32) -> (i32, i32) {
    %c0_i32 = arith.constant 0 : i32
    %c0_i32_0 = arith.constant 0 : i32
    %c0_i32_1 = arith.constant 0 : i32
    return %c0_i32, %c0_i32_0 : i32, i32
  }
  func.func @transform_5(%arg0: i32) -> (i32, i32) {
    %c0_i32 = arith.constant 0 : i32
    %c0_i32_0 = arith.constant 0 : i32
    %c0_i32_1 = arith.constant 0 : i32
    return %c0_i32, %c0_i32_0 : i32, i32
  }
  func.func @transform_6(%arg0: i32) -> (i32, i32) {
    %c0_i32 = arith.constant 0 : i32
    %c0_i32_0 = arith.constant 0 : i32
    %c0_i32_1 = arith.constant 0 : i32
    return %c0_i32, %c0_i32_0 : i32, i32
  }
  func.func @transform_7(%arg0: i32) -> (i32, i32) {
    %c0_i32 = arith.constant 0 : i32
    %c0_i32_0 = arith.constant 0 : i32
    return %arg0, %c0_i32 : i32, i32
  }
}

</mosaic_0001>

<bundles_post_ra>
// kernel: tpu_custom_call.1
= control target key start
LH: loop header
LB: loop body
LE: loop exit
PB: predicated region body
PF: predicated region fallthrough
CT: control target
= control target key end

     0   :  { %12 = vsyncpa [#allocation3], 0  ;;  %s505_s0 = inlined_call_operand.hbm [shape: bf16[8,16], index: 0, kind: input, shape index: {}]   ;;  %s506_s1 = inlined_call_operand.hbm [shape: bf16[16,64], index: 1, kind: input, shape index: {}]   ;;  %s507_s2 = inlined_call_operand.vmem [shape: f32[1,64], index: 2, kind: input, shape index: {}]   ;;  %s508_s3 = inlined_call_operand.hbm [shape: bf16[64,64], index: 3, kind: input, shape index: {}]   ;;  %s509_s4 = inlined_call_operand.vmem [shape: f32[1,64], index: 4, kind: input, shape index: {}]   ;;  %s510_s5 = inlined_call_operand.hbm [shape: bf16[64,128], index: 5, kind: input, shape index: {}]   ;;  %s511_s6 = inlined_call_operand.vmem [shape: f32[1,128], index: 6, kind: input, shape index: {}]   ;;  %s512_s7 = inlined_call_operand.hbm [shape: f32[8,128], index: 7, kind: output, shape index: {}]  }
   0x1   :  { %13 = vsyncpa [#allocation6], 0 }
   0x2   :  { %14 = vsyncpa [#allocation9], 0  ;;  %s31_s26 = sshll.u32 %s506_s1, 4  ;;  %s32_s26 = int_to_ptr.hbm [resolvable:$true] %s31_s26 }
   0x3   :  { %15 = vsyncpa [#allocation4], 0  ;;  %s434_s27 = smov [#allocation5]   ;;  %s21_s8 = sshll.u32 %s505_s0, 4  ;;  %s22_s8 = int_to_ptr.hbm [resolvable:$true] %s21_s8 }
   0x4   :  { %s33_s28 = sshll.u32 %s434_s27, 4  ;;  %s435_s9 = smov 64   ;;  %s34_s28 = int_to_ptr.vmem [resolvable:$true] %s33_s28 }
   0x5   :  { %s436_s10 = smov 4   ;;  %s437_s11 = smov [#allocation2]  }
   0x6   :  { %39 = dma.hbm_to_vmem [thread:$0]  %s32_s26, 128, %s34_s28, [#allocation6], %s435_s9, %s435_s9, %s436_s10  }
   0x7   :  { %s23_s12 = sshll.u32 %s437_s11, 4  ;;  %s46_s15 = sshll.u32 %s508_s3, 4  ;;  %s24_s12 = int_to_ptr.vmem [resolvable:$true] %s23_s12  ;;  %s47_s15 = int_to_ptr.hbm [resolvable:$true] %s46_s15 }
   0x8   :  { %26 = dma.hbm_to_vmem [thread:$0]  %s22_s8, 64, %s24_s12, [#allocation3]  }
   0x9   :  { %s61_s17 = sshll.u32 %s510_s5, 4  ;;  %s438_s18 = smov [#allocation7]   ;;  %s62_s17 = int_to_ptr.hbm [resolvable:$true] %s61_s17 }
   0xa   :  { %s48_s19 = sshll.u32 %s438_s18, 4  ;;  %s439_s0 = smov [#allocation8]   ;;  %s49_s19 = int_to_ptr.vmem [resolvable:$true] %s48_s19 }
   0xb   :  { %54 = dma.hbm_to_vmem [thread:$0]  %s47_s15, 512, %s49_s19, [#allocation6], %s435_s9, %s435_s9, %s436_s10  }
   0xc   :  { %s63_s20 = sshll.u32 %s439_s0, 4  ;;  %s64_s20 = int_to_ptr.vmem [resolvable:$true] %s63_s20 }
   0xd   :  { %69 = dma.hbm_to_vmem [thread:$0]  %s62_s17, 512, %s64_s20, [#allocation9], %s435_s9, %s435_s9, %s436_s10  }
   0xe   :  { %426 = dma.done.wait [#allocation3], 64  }
   0xf   :  { %427 = vsyncadd [#allocation3], 4294967232 }
  0x10   :  { %428 = dma.done.wait [#allocation6], 640  }
  0x11   :  { %429 = vsyncadd [#allocation6], 4294966656 }
  0x12   :  { %430 = dma.done.wait [#allocation9], 512  }
  0x13   :  { %431 = vsyncadd [#allocation9], 4294966784  ;;  %v287_v0 = vld [vmem:[#allocation5] sm:$0xff]  ;;  %v89_v2 = vld [vmem:[#allocation2] sm:$0xf]  ;;  %vm102_vm0 = vcmask 130048  }
  0x14   :  { %v291_v1 = vld [vmem:[#allocation7 + $0x18] sm:$0xff]  ;;  %113 = vmatpush.bf16.msra.mxu0 %v287_v0  ;;  %v290_v3 = vld [vmem:[#allocation7 + $0x10] sm:$0xff]  ;;  %v289_v4 = vld [vmem:[#allocation7 + $0x8] sm:$0xff]  ;;  %vm157_vm1 = vcmask 523264   ;;  %s440_s24 = smov [#allocation10]   ;;  %s236_s28 = sshll.u32 %s512_s7, 4  ;;  %s237_s28 = int_to_ptr.hbm [resolvable:$true] %s236_s28 }
  0x15   :  { %165 = vmatpush.bf16.msra.mxu1 %v291_v1  ;;  %v288_v5 = vld [vmem:[#allocation7] sm:$0xff]  ;;  %v295_v6 = vld [vmem:[#allocation8 + $0x18] sm:$0xff]  ;;  %v294_v7 = vld [vmem:[#allocation8 + $0x10] sm:$0xff]  ;;  %s234_s25 = sshll.u32 %s440_s24, 4  ;;  %s235_s25 = int_to_ptr.vmem [resolvable:$true] %s234_s25 }
  0x16   :  { %219 = vmatpush.bf16.msra.mxu2 %v295_v6  ;;  %v303_v8 = vld [vmem:[%s507_s2] ss:$0 sm:$0xff]  ;;  %v293_v14 = vld [vmem:[#allocation8 + $0x8] sm:$0xff]  ;;  %v292_v15 = vld [vmem:[#allocation8] sm:$0xff] }
  0x17   :  { %252 = vmatmul.msk.bf16.vlgmr.msra.gmra.mxu0 %vm102_vm0, %v89_v2  ;;  %v304_v16 = vld [vmem:[%s509_s4] ss:$0 sm:$0xff] }
  0x18   :  { %v305_v22 = vld [vmem:[%s511_s6] ss:$0 sm:$0xff] }
  0x19   :  { %166 = vmatpush.bf16.msra.mxu1 %v290_v3 }
  0x1a   :  { %220 = vmatpush.bf16.msra.mxu2 %v294_v7 }
  0x1d   :  { %167 = vmatpush.bf16.msra.mxu1 %v289_v4 }
  0x1e   :  { %221 = vmatpush.bf16.msra.mxu2 %v293_v14 }
  0x21   :  { %168 = vmatpush.bf16.msra.mxu1 %v288_v5 }
  0x22   :  { %222 = vmatpush.bf16.msra.mxu2 %v292_v15 }
  0x94   :  { %v115_v9 = vpop.f32.mrf.mxu0 }
  0x95   :  { %v116_v10 = vadd.f32 %v303_v8, %v115_v9 }
  0x97   :  { %v119_v11 = vmax.f32 %v116_v10, 0.0 }
  0x99   :  { %v120_v12 = vpack.c.bf16 %v119_v11, %v119_v11 }
  0x9b   :  { %269 = vmatmul.msk.bf16.vlgmr.msra.gmra.mxu1 %vm157_vm1, %v120_v12 }
  0x9c   :  { %v117_v13 = vpop.f32.mrf.mxu0 }
 0x118   :  { %v170_v17 = vpop.f32.mrf.mxu1 }
 0x119   :  { %v171_v18 = vadd.f32 %v304_v16, %v170_v17 }
 0x11b   :  { %v174_v19 = vmax.f32 %v171_v18, 0.0 }
 0x11d   :  { %v175_v20 = vpack.c.bf16 %v174_v19, %v174_v19 }
 0x11f   :  { %286 = vmatmul.msk.bf16.vlgmr.msra.gmra.mxu2 %vm157_vm1, %v175_v20 }
 0x120   :  { %v172_v21 = vpop.f32.mrf.mxu1 }
 0x1a2   :  { %v224_v23 = vpop.f32.mrf.mxu2 }
 0x1a3   :  { %v225_v24 = vadd.f32 %v305_v22, %v224_v23 }
 0x1a5   :  { %228 = vst [vmem:[#allocation10] sm:$0xff] %v225_v24 }
 0x1a6   :  { %239 = dma.vmem_to_hbm [thread:$0]  %s235_s25, 128, %s237_s28, [#allocation4]  }
 0x1aa   :  { %v226_v25 = vpop.f32.mrf.mxu2 }
 0x1ab   :  { %432 = dma.done.wait [#allocation4], 128  }
 0x1ac   :  { %433 = vsyncadd [#allocation4], 4294967168 }
 0x1ad   :  { %244 = vsyncpa [#allocation3], 1 }
 0x1ae   :  { %245 = vsyncpa [#allocation6], 1 }
 0x1af   :  { %246 = vsyncpa [#allocation9], 1 }
 0x1b0   :  { %247 = vsyncpa [#allocation4], 1 }

</bundles_post_ra>
